<compile_context>
chip_gen: v6e
topology: v6e:2x2x1
jax: 0.10.0
libtpu: 0.0.40
codegen_flags: <defaults>
</compile_context>

<pallas_src>
import math

import jax
import jax.numpy as jnp
import numpy as np
from jax.experimental import pallas as pl
from jax.experimental.pallas import tpu as pltpu


# ------------------------------ Pallas kernel -------------------------------

def _make_fused_kernel(n_layers, relu_flags):
    """Fused MLP-style chain: h -> (h @ W_i + b_i) [-> relu] for each layer."""
    def kernel(*refs):
        x_ref = refs[0]
        o_ref = refs[-1]
        h = x_ref[...].astype(jnp.float32)
        for i in range(n_layers):                      # static unroll over layers
            w = refs[1 + 2 * i][...]
            b = refs[2 + 2 * i][...]
            h = jnp.dot(h, w, preferred_element_type=jnp.float32) + b
            if relu_flags[i]:
                h = jnp.maximum(h, 0.0)
        o_ref[...] = h.astype(o_ref.dtype)
    return kernel


def fused_generator_forward(x, mats, biases, relu_flags):
    """x: (B, latent). mats[i]: (D_i, D_{i+1}). biases[i]: (1, D_{i+1}).
    Returns the flat (B, Cout*Lout) output (channel-major flattening)."""
    B, D = x.shape
    n_layers = len(mats)
    out_dim = mats[-1].shape[1]

    # Batch chunking: one grid step for small B, 8-row chunks (marked
    # "parallel" -> shardable across v7x's two TensorCores) for larger B.
    bb = 8 if (B % 8 == 0) else B
    grid = (B // bb,)

    in_specs = [pl.BlockSpec((bb, D), lambda i: (i, 0))]
    args = [x]
    for w, b in zip(mats, biases):
        in_specs.append(pl.BlockSpec(w.shape, lambda i: (0, 0)))   # weights resident
        in_specs.append(pl.BlockSpec(b.shape, lambda i: (0, 0)))
        args.append(w)
        args.append(b)

    return pl.pallas_call(
        _make_fused_kernel(n_layers, tuple(relu_flags)),
        out_shape=jax.ShapeDtypeStruct((B, out_dim), x.dtype),
        grid=grid,
        in_specs=in_specs,
        out_specs=pl.BlockSpec((bb, out_dim), lambda i: (i, 0)),   # lane-dense store
        compiler_params=pltpu.CompilerParams(dimension_semantics=("parallel",)),
    )(*args)


# ----------------------- Host-side weight preprocessing ----------------------

def _deconv_as_matrix(w, bias, L_in, stride, padding):
    """Exact dense equivalent of nn.ConvTranspose1d for a fixed input length.

    w: (Cin, Cout, K) PyTorch layout, bias: (Cout,).
    Returns (M, b_full, L_out) with M: (Cin*L_in, Cout*L_out) such that
      y_flat = x_flat @ M + b_full
    where flattening is channel-major (index = c*L + l), matching torch .view.
    """
    w = np.asarray(w, np.float32)
    bias = np.asarray(bias, np.float32)
    Cin, Cout, K = w.shape
    L_out = (L_in - 1) * stride - 2 * padding + K
    M = np.zeros((Cin * L_in, Cout * L_out), np.float32)
    ci = np.arange(Cin)[:, None]
    co = np.arange(Cout)[None, :]
    for t in range(L_in):
        for k in range(K):
            o = t * stride - padding + k
            if 0 <= o < L_out:
                M[ci * L_in + t, co * L_out + o] += w[:, :, k]
    b_full = np.repeat(bias, L_out).astype(np.float32)
    return M, b_full, L_out


# ------------------------------- The "module" -------------------------------

class WaveGANGeneratorPallas:
    """WaveGAN generator (n_classes=0, normalization=None branch)."""

    def __init__(self, key, latent_dim=32, init_dim=8, init_channels=16,
                 output_size=64, output_channels=4, kernel_size=8, stride=2):
        if kernel_size % 2 == 1:
            raise ValueError("The kernel size must be even")
        self.latent_dim = latent_dim
        self.init_dim = init_dim
        self.init_channels = init_channels
        self.output_size = output_size
        self.output_channels = output_channels
        self.kernel_size = kernel_size
        self.stride = stride
        self.padding = kernel_size // 2 - 1
        self.deconv_layers = int(math.log2(output_size // init_dim)) - 1
        if self.deconv_layers > int(math.log2(init_channels)):
            raise ValueError("Not enough initial channels")

        keys = jax.random.split(key, 2 + 2 * (self.deconv_layers + 1))
        ki = iter(keys)
        H = init_channels * init_dim
        # Raw parameters in PyTorch layouts (nn.Linear: (out,in); ConvT1d: (Cin,Cout,K)).
        self.fc_w = 0.1 * jax.random.normal(next(ki), (H, latent_dim), jnp.float32)
        self.fc_b = 0.1 * jax.random.normal(next(ki), (H,), jnp.float32)
        self.deconvs = []
        c = init_channels
        for _ in range(self.deconv_layers):
            w = 0.1 * jax.random.normal(next(ki), (c, c // 2, kernel_size), jnp.float32)
            bb = 0.1 * jax.random.normal(next(ki), (c // 2,), jnp.float32)
            self.deconvs.append((w, bb))
            c //= 2
        self.out_w = 0.1 * jax.random.normal(next(ki), (c, output_channels, kernel_size), jnp.float32)
        self.out_b = 0.1 * jax.random.normal(next(ki), (output_channels,), jnp.float32)

        # ---- Hoisted (one-time) weight preprocessing for the fused kernel ----
        mats = [np.asarray(self.fc_w, np.float32).T]          # (latent, C0*L0)
        biases = [np.asarray(self.fc_b, np.float32)]
        relu = [False]                                         # no ReLU after fc1
        L = init_dim
        for (w, bb) in self.deconvs:
            M, bf, L = _deconv_as_matrix(w, bb, L, stride, self.padding)
            mats.append(M), biases.append(bf), relu.append(True)      # ConvT + ReLU
        M, bf, L = _deconv_as_matrix(self.out_w, self.out_b, L, stride, self.padding)
        mats.append(M), biases.append(bf), relu.append(False)         # final ConvT
        self._final_len = L
        self.layer_mats = [jnp.asarray(m) for m in mats]
        self.layer_biases = [jnp.asarray(b).reshape(1, -1) for b in biases]
        self.relu_flags = tuple(relu)

    def __call__(self, x, labels=None):
        # TODO(synk): class-conditional path (labels / nn.Embedding / one-hot concat)
        #             not implemented (module default n_classes=0).
        assert labels is None
        B = x.shape[0]
        flat = fused_generator_forward(x, self.layer_mats, self.layer_biases,
                                       self.relu_flags)                # (B, C*L)
        y = flat.reshape(B, self.output_channels, self._final_len)     # free NCL view
        assert y.shape[2] == self.output_size, f"Output size is {y.shape[2]}"
        return y


# ----------------------- Pure-numpy reference (check) -----------------------

def _ref_deconv(x, w, b, s, p):
    B, Cin, L = x.shape
    _, Cout, K = w.shape
    Lout = (L - 1) * s - 2 * p + K
    y = np.broadcast_to(b[None, :, None], (B, Cout, Lout)).astype(np.float64).copy()
    for o in range(Lout):
        for k in range(K):
            t = o + p - k
            if t % s == 0 and 0 <= t // s < L:
                y[:, :, o] += np.einsum("bi,io->bo", x[:, :, t // s], w[:, :, k])
    return y


def _ref_forward(model, x):
    xn = np.asarray(x, np.float64)
    h = xn @ np.asarray(model.fc_w, np.float64).T + np.asarray(model.fc_b, np.float64)
    h = h.reshape(x.shape[0], model.init_channels, model.init_dim)
    for w, bb in model.deconvs:
        h = _ref_deconv(h, np.asarray(w, np.float64), np.asarray(bb, np.float64),
                        model.stride, model.padding)
        h = np.maximum(h, 0.0)
    h = _ref_deconv(h, np.asarray(model.out_w, np.float64),
                    np.asarray(model.out_b, np.float64), model.stride, model.padding)
    return h


if __name__ == "__main__":
    key = jax.random.PRNGKey(0)
    kp, kx = jax.random.split(key)
    model = WaveGANGeneratorPallas(kp, latent_dim=32, init_dim=8, init_channels=16,
                                   output_size=64, output_channels=4, kernel_size=8)
    x = jax.random.normal(kx, (2, model.latent_dim), jnp.float32)
    y = model(x)
    y = jax.block_until_ready(y)
    assert y.shape == (2, model.output_channels, model.output_size), y.shape

    ref = _ref_forward(model, np.asarray(x))
    np.testing.assert_allclose(np.asarray(y), ref, rtol=2e-2, atol=2e-2)
    print("KERNEL_OK")
</pallas_src>

<mosaic_0001>
module attributes {stable_mosaic.version = 11 : i64} {
  func.func @kernel(%arg0: i32, %arg1: memref<2x32xf32, #tpu.memory_space<vmem>>, %arg2: memref<32x128xf32, #tpu.memory_space<vmem>>, %arg3: memref<1x128xf32, #tpu.memory_space<vmem>>, %arg4: memref<128x128xf32, #tpu.memory_space<vmem>>, %arg5: memref<1x128xf32, #tpu.memory_space<vmem>>, %arg6: memref<128x128xf32, #tpu.memory_space<vmem>>, %arg7: memref<1x128xf32, #tpu.memory_space<vmem>>, %arg8: memref<128x256xf32, #tpu.memory_space<vmem>>, %arg9: memref<1x256xf32, #tpu.memory_space<vmem>>, %arg10: memref<2x256xf32, #tpu.memory_space<vmem>>) attributes {dimension_semantics = [#tpu.dimension_semantics<parallel>], iteration_bounds = array<i64: 1>, scalar_prefetch = 0 : i64, scratch_operands = 0 : i64, tpu.core_type = #tpu.core_type<tc>, window_params = [{transform_indices = @transform_0, window_bounds = array<i64: 2, 32>}, {pipeline_mode = #tpu.pipeline_mode<synchronous>, transform_indices = @transform_1, window_bounds = array<i64: 32, 128>}, {pipeline_mode = #tpu.pipeline_mode<synchronous>, transform_indices = @transform_2, window_bounds = array<i64: 1, 128>}, {pipeline_mode = #tpu.pipeline_mode<synchronous>, transform_indices = @transform_3, window_bounds = array<i64: 128, 128>}, {pipeline_mode = #tpu.pipeline_mode<synchronous>, transform_indices = @transform_4, window_bounds = array<i64: 1, 128>}, {pipeline_mode = #tpu.pipeline_mode<synchronous>, transform_indices = @transform_5, window_bounds = array<i64: 128, 128>}, {pipeline_mode = #tpu.pipeline_mode<synchronous>, transform_indices = @transform_6, window_bounds = array<i64: 1, 128>}, {pipeline_mode = #tpu.pipeline_mode<synchronous>, transform_indices = @transform_7, window_bounds = array<i64: 128, 256>}, {pipeline_mode = #tpu.pipeline_mode<synchronous>, transform_indices = @transform_8, window_bounds = array<i64: 1, 256>}, {transform_indices = @transform_9, window_bounds = array<i64: 2, 256>}]} {
    %c0 = arith.constant 0 : index
    %c0_0 = arith.constant 0 : index
    %0 = vector.load %arg1[%c0, %c0_0] : memref<2x32xf32, #tpu.memory_space<vmem>>, vector<2x32xf32>
    %c0_1 = arith.constant 0 : index
    %c0_2 = arith.constant 0 : index
    %1 = vector.load %arg2[%c0_1, %c0_2] : memref<32x128xf32, #tpu.memory_space<vmem>>, vector<32x128xf32>
    %c0_3 = arith.constant 0 : index
    %c0_4 = arith.constant 0 : index
    %2 = vector.load %arg3[%c0_3, %c0_4] : memref<1x128xf32, #tpu.memory_space<vmem>>, vector<1x128xf32>
    %cst = arith.constant dense<0.000000e+00> : vector<2x128xf32>
    %3 = tpu.matmul %0, %1, %cst {dimension_numbers = #tpu.dot_dimension_numbers<[1], [0], [0], [1], [0, 0, 1, 1], [], []>} : vector<2x32xf32>, vector<32x128xf32>, vector<2x128xf32> -> vector<2x128xf32>
    %4 = vector.broadcast %2 : vector<1x128xf32> to vector<2x128xf32>
    %5 = arith.addf %3, %4 : vector<2x128xf32>
    %c0_5 = arith.constant 0 : index
    %c0_6 = arith.constant 0 : index
    %6 = vector.load %arg4[%c0_5, %c0_6] : memref<128x128xf32, #tpu.memory_space<vmem>>, vector<128x128xf32>
    %c0_7 = arith.constant 0 : index
    %c0_8 = arith.constant 0 : index
    %7 = vector.load %arg5[%c0_7, %c0_8] : memref<1x128xf32, #tpu.memory_space<vmem>>, vector<1x128xf32>
    %cst_9 = arith.constant dense<0.000000e+00> : vector<2x128xf32>
    %8 = tpu.matmul %5, %6, %cst_9 {dimension_numbers = #tpu.dot_dimension_numbers<[1], [0], [0], [1], [0, 0, 1, 1], [], []>} : vector<2x128xf32>, vector<128x128xf32>, vector<2x128xf32> -> vector<2x128xf32>
    %9 = vector.broadcast %7 : vector<1x128xf32> to vector<2x128xf32>
    %10 = arith.addf %8, %9 : vector<2x128xf32>
    %cst_10 = arith.constant 0.000000e+00 : f32
    %11 = vector.broadcast %cst_10 : f32 to vector<2x128xf32>
    %12 = arith.maximumf %10, %11 : vector<2x128xf32>
    %c0_11 = arith.constant 0 : index
    %c0_12 = arith.constant 0 : index
    %13 = vector.load %arg6[%c0_11, %c0_12] : memref<128x128xf32, #tpu.memory_space<vmem>>, vector<128x128xf32>
    %c0_13 = arith.constant 0 : index
    %c0_14 = arith.constant 0 : index
    %14 = vector.load %arg7[%c0_13, %c0_14] : memref<1x128xf32, #tpu.memory_space<vmem>>, vector<1x128xf32>
    %cst_15 = arith.constant dense<0.000000e+00> : vector<2x128xf32>
    %15 = tpu.matmul %12, %13, %cst_15 {dimension_numbers = #tpu.dot_dimension_numbers<[1], [0], [0], [1], [0, 0, 1, 1], [], []>} : vector<2x128xf32>, vector<128x128xf32>, vector<2x128xf32> -> vector<2x128xf32>
    %16 = vector.broadcast %14 : vector<1x128xf32> to vector<2x128xf32>
    %17 = arith.addf %15, %16 : vector<2x128xf32>
    %cst_16 = arith.constant 0.000000e+00 : f32
    %18 = vector.broadcast %cst_16 : f32 to vector<2x128xf32>
    %19 = arith.maximumf %17, %18 : vector<2x128xf32>
    %c0_17 = arith.constant 0 : index
    %c0_18 = arith.constant 0 : index
    %20 = vector.load %arg8[%c0_17, %c0_18] : memref<128x256xf32, #tpu.memory_space<vmem>>, vector<128x256xf32>
    %c0_19 = arith.constant 0 : index
    %c0_20 = arith.constant 0 : index
    %21 = vector.load %arg9[%c0_19, %c0_20] : memref<1x256xf32, #tpu.memory_space<vmem>>, vector<1x256xf32>
    %cst_21 = arith.constant dense<0.000000e+00> : vector<2x256xf32>
    %22 = tpu.matmul %19, %20, %cst_21 {dimension_numbers = #tpu.dot_dimension_numbers<[1], [0], [0], [1], [0, 0, 1, 1], [], []>} : vector<2x128xf32>, vector<128x256xf32>, vector<2x256xf32> -> vector<2x256xf32>
    %23 = vector.broadcast %21 : vector<1x256xf32> to vector<2x256xf32>
    %24 = arith.addf %22, %23 : vector<2x256xf32>
    %c0_22 = arith.constant 0 : index
    %c0_23 = arith.constant 0 : index
    %25 = vector.load %arg10[%c0_22, %c0_23] : memref<2x256xf32, #tpu.memory_space<vmem>>, vector<2x256xf32>
    tpu.vector_store %arg10[%c0_22, %c0_23], %24 {strides = array<i32>} : memref<2x256xf32, #tpu.memory_space<vmem>>, vector<2x256xf32>,
    return
  }
  func.func @transform_0(%arg0: i32) -> (i32, i32) {
    %c0_i32 = arith.constant 0 : i32
    %c0_i32_0 = arith.constant 0 : i32
    return %arg0, %c0_i32 : i32, i32
  }
  func.func @transform_1(%arg0: i32) -> (i32, i32) {
    %c0_i32 = arith.constant 0 : i32
    %c0_i32_0 = arith.constant 0 : i32
    %c0_i32_1 = arith.constant 0 : i32
    return %c0_i32, %c0_i32_0 : i32, i32
  }
  func.func @transform_2(%arg0: i32) -> (i32, i32) {
    %c0_i32 = arith.constant 0 : i32
    %c0_i32_0 = arith.constant 0 : i32
    %c0_i32_1 = arith.constant 0 : i32
    return %c0_i32, %c0_i32_0 : i32, i32
  }
  func.func @transform_3(%arg0: i32) -> (i32, i32) {
    %c0_i32 = arith.constant 0 : i32
    %c0_i32_0 = arith.constant 0 : i32
    %c0_i32_1 = arith.constant 0 : i32
    return %c0_i32, %c0_i32_0 : i32, i32
  }
  func.func @transform_4(%arg0: i32) -> (i32, i32) {
    %c0_i32 = arith.constant 0 : i32
    %c0_i32_0 = arith.constant 0 : i32
    %c0_i32_1 = arith.constant 0 : i32
    return %c0_i32, %c0_i32_0 : i32, i32
  }
  func.func @transform_5(%arg0: i32) -> (i32, i32) {
    %c0_i32 = arith.constant 0 : i32
    %c0_i32_0 = arith.constant 0 : i32
    %c0_i32_1 = arith.constant 0 : i32
    return %c0_i32, %c0_i32_0 : i32, i32
  }
  func.func @transform_6(%arg0: i32) -> (i32, i32) {
    %c0_i32 = arith.constant 0 : i32
    %c0_i32_0 = arith.constant 0 : i32
    %c0_i32_1 = arith.constant 0 : i32
    return %c0_i32, %c0_i32_0 : i32, i32
  }
  func.func @transform_7(%arg0: i32) -> (i32, i32) {
    %c0_i32 = arith.constant 0 : i32
    %c0_i32_0 = arith.constant 0 : i32
    %c0_i32_1 = arith.constant 0 : i32
    return %c0_i32, %c0_i32_0 : i32, i32
  }
  func.func @transform_8(%arg0: i32) -> (i32, i32) {
    %c0_i32 = arith.constant 0 : i32
    %c0_i32_0 = arith.constant 0 : i32
    %c0_i32_1 = arith.constant 0 : i32
    return %c0_i32, %c0_i32_0 : i32, i32
  }
  func.func @transform_9(%arg0: i32) -> (i32, i32) {
    %c0_i32 = arith.constant 0 : i32
    %c0_i32_0 = arith.constant 0 : i32
    return %arg0, %c0_i32 : i32, i32
  }
}

</mosaic_0001>

<bundles_post_ra>
// kernel: tpu_custom_call.1
= control target key start
LH: loop header
LB: loop body
LE: loop exit
PB: predicated region body
PF: predicated region fallthrough
CT: control target
= control target key end

     0   :  { %14 = vsyncpa [#allocation3], 0  ;;  %s926_s0 = inlined_call_operand.hbm [shape: f32[2,32], index: 0, kind: input, shape index: {}]   ;;  %s927_s1 = inlined_call_operand.hbm [shape: f32[32,128], index: 1, kind: input, shape index: {}]   ;;  %s928_s2 = inlined_call_operand.vmem [shape: f32[1,128], index: 2, kind: input, shape index: {}]   ;;  %s929_s3 = inlined_call_operand.hbm [shape: f32[128,128], index: 3, kind: input, shape index: {}]   ;;  %s930_s4 = inlined_call_operand.vmem [shape: f32[1,128], index: 4, kind: input, shape index: {}]   ;;  %s931_s5 = inlined_call_operand.hbm [shape: f32[128,128], index: 5, kind: input, shape index: {}]   ;;  %s932_s6 = inlined_call_operand.vmem [shape: f32[1,128], index: 6, kind: input, shape index: {}]   ;;  %s933_s7 = inlined_call_operand.hbm [shape: f32[128,256], index: 7, kind: input, shape index: {}]   ;;  %s934_s8 = inlined_call_operand.vmem [shape: f32[1,256], index: 8, kind: input, shape index: {}]   ;;  %s935_s9 = inlined_call_operand.hbm [shape: f32[2,256], index: 9, kind: output, shape index: {}]  }
   0x1   :  { %15 = vsyncpa [#allocation6], 0 }
   0x2   :  { %16 = vsyncpa [#allocation9], 0 }
   0x3   :  { %17 = vsyncpa [#allocation4], 0  ;;  %s782_s30 = smov [#allocation5]  }
   0x4   :  { %s33_s10 = sshll.u32 %s782_s30, 4  ;;  %s34_s10 = int_to_ptr.vmem [resolvable:$true] %s33_s10 }
   0x5   :  { %s662_s11 = scalar_lea.vmem %s34_s10, 512  ;;  %p667_p1 = scmp.lt.s32.totalorder %s34_s10, %s34_s10 }
   0x6   :  { %p663_p0 = scmp.ne.s32.totalorder %s34_s10, %s662_s11  ;;  %p668_p2 = scmp.lt.s32.totalorder %s662_s11, %s662_s11 }
   0x8   :  { %p669_p3 = por %p668_p2, %p667_p1 }
   0xa   :  { %p670_p4 = pnand %p669_p3, %p663_p0 }
   0xc   :  { %673 = shalt.err (!%p670_p4)
}
   0xd   :  { %s783_s12 = smov 128   ;;  %s784_s13 = smov 8  }
   0xe   :  { %39 = dma.hbm_to_vmem [thread:$0]  %s927_s1, 512, %s34_s10, [#allocation6], %s783_s12, %s783_s12, %s784_s13  }
   0xf   :  { %s785_s16 = smov [#allocation8]   ;;  %s786_s18 = smov [#allocation2]  }
  0x10   :  { %s61_s17 = sshll.u32 %s785_s16, 4  ;;  %s24_s19 = sshll.u32 %s786_s18, 4  ;;  %s62_s17 = int_to_ptr.vmem [resolvable:$true] %s61_s17  ;;  %s25_s19 = int_to_ptr.vmem [resolvable:$true] %s24_s19 }
  0x11   :  { %s682_s20 = scalar_lea.vmem %s62_s17, 2048  ;;  %p687_p6 = scmp.lt.s32.totalorder %s62_s17, %s62_s17 }
  0x12   :  { %p683_p5 = scmp.ne.s32.totalorder %s62_s17, %s682_s20  ;;  %p688_p7 = scmp.lt.s32.totalorder %s682_s20, %s682_s20 }
  0x14   :  { %p689_p8 = por %p688_p7, %p687_p6 }
  0x16   :  { %p690_p9 = pnand %p689_p8, %p683_p5 }
  0x18   :  { %693 = shalt.err (!%p690_p9)
}
  0x19   :  { %67 = dma.hbm_to_vmem [thread:$0]  %s931_s5, 2048, %s62_s17, [#allocation9], %s783_s12, %s783_s12, %s784_s13  }
  0x1a   :  { %s702_s1 = scalar_lea.vmem %s25_s19, 32  ;;  %p707_p11 = scmp.lt.s32.totalorder %s25_s19, %s25_s19 }
  0x1b   :  { %p703_p10 = scmp.ne.s32.totalorder %s25_s19, %s702_s1  ;;  %p708_p12 = scmp.lt.s32.totalorder %s702_s1, %s702_s1 }
  0x1d   :  { %p709_p13 = por %p708_p12, %p707_p11 }
  0x1f   :  { %p710_p0 = pnand %p709_p13, %p703_p10 }
  0x21   :  { %713 = shalt.err (!%p710_p0)
}
  0x22   :  { %27 = dma.hbm_to_vmem [thread:$0]  %s926_s0, 32, %s25_s19, [#allocation3]  }
  0x23   :  { %s787_s25 = smov [#allocation7]   ;;  %s788_s27 = smov [#allocation10]  }
  0x24   :  { %s47_s26 = sshll.u32 %s787_s25, 4  ;;  %s75_s28 = sshll.u32 %s788_s27, 4  ;;  %s48_s26 = int_to_ptr.vmem [resolvable:$true] %s47_s26  ;;  %s76_s28 = int_to_ptr.vmem [resolvable:$true] %s75_s28 }
  0x25   :  { %s722_s29 = scalar_lea.vmem %s48_s26, 2048  ;;  %p727_p2 = scmp.lt.s32.totalorder %s48_s26, %s48_s26 }
  0x26   :  { %p723_p1 = scmp.ne.s32.totalorder %s48_s26, %s722_s29  ;;  %p728_p3 = scmp.lt.s32.totalorder %s722_s29, %s722_s29 }
  0x28   :  { %p729_p4 = por %p728_p3, %p727_p2 }
  0x2a   :  { %p730_p5 = pnand %p729_p4, %p723_p1 }
  0x2c   :  { %733 = shalt.err (!%p730_p5)
}
  0x2d   :  { %53 = dma.hbm_to_vmem [thread:$0]  %s929_s3, 2048, %s48_s26, [#allocation6], %s783_s12, %s783_s12, %s784_s13  }
  0x2e   :  { %s742_s0 = scalar_lea.vmem %s76_s28, 4096  ;;  %p747_p7 = scmp.lt.s32.totalorder %s76_s28, %s76_s28 }
  0x2f   :  { %p743_p6 = scmp.ne.s32.totalorder %s76_s28, %s742_s0  ;;  %p748_p8 = scmp.lt.s32.totalorder %s742_s0, %s742_s0 }
  0x31   :  { %p749_p9 = por %p748_p8, %p747_p7 }
  0x33   :  { %p750_p10 = pnand %p749_p9, %p743_p6 }
  0x35   :  { %753 = shalt.err (!%p750_p10)
}
  0x36   :  { %s789_s10 = smov 256   ;;  %s790_s11 = smov 16  }
  0x37   :  { %81 = dma.hbm_to_vmem [thread:$0]  %s933_s7, 4096, %s76_s28, [#allocation9], %s789_s10, %s789_s10, %s790_s11  }
  0x38   :  { %774 = dma.done.wait [#allocation3], 32  }
  0x39   :  { %775 = vsyncadd [#allocation3], 4294967264 }
  0x3a   :  { %776 = dma.done.wait [#allocation6], 2560  }
  0x3b   :  { %777 = vsyncadd [#allocation6], 4294964736 }
  0x3c   :  { %778 = dma.done.wait [#allocation9], 6144  }
  0x3d   :  { %779 = vsyncadd [#allocation9], 4294961152  ;;  %v791_v0 = vmov 0.0   ;;  %vm792_vm0 = vmmov 0   ;;  %v103_v1 = vld [vmem:[#allocation5 + $0x18] sm:$0xff]  ;;  %v102_v2 = vld [vmem:[#allocation5 + $0x10] sm:$0xff] }
  0x3e   :  { %561 = vmatprep.subr.mxu0 %v791_v0  ;;  %569 = vmatprep.mubr.msk.f32.mxu0 %vm792_vm0, %v791_v0  ;;  %v200_v3 = vld [vmem:[#allocation7 + $0x78] sm:$0xff]  ;;  %v101_v4 = vld [vmem:[#allocation5 + $0x8] sm:$0xff]  ;;  %v199_v5 = vld [vmem:[#allocation7 + $0x70] sm:$0xff]  ;;  %vm111_vm1 = vcmask 261120   ;;  %s793_s18 = smov [#allocation11]  }
  0x3f   :  { %572 = vmatprep.subr.mxu1 %v791_v0  ;;  %604 = vmatprep.mubr.msk.f32.mxu1 %vm792_vm0, %v791_v0  ;;  %v198_v6 = vld [vmem:[#allocation7 + $0x68] sm:$0xff]  ;;  %v100_v7 = vld [vmem:[#allocation5] sm:$0xff]  ;;  %v99_v8 = vld [vmem:[#allocation2] sm:$0x3]  ;;  %s506_s19 = sshll.u32 %s793_s18, 4  ;;  %s507_s19 = int_to_ptr.vmem [resolvable:$true] %s506_s19 }
  0x40   :  { %562 = vmatpush3.msra.mxu0 %v103_v1  ;;  %573 = vmatpush3.msra.mxu1 %v200_v3  ;;  %v197_v9 = vld [vmem:[#allocation7 + $0x60] sm:$0xff]  ;;  %v196_v10 = vld [vmem:[#allocation7 + $0x58] sm:$0xff]  ;;  %v195_v11 = vld [vmem:[#allocation7 + $0x50] sm:$0xff]  ;;  %p759_p12 = scmp.lt.s32.totalorder %s507_s19, %s507_s19 }
  0x41   :  { %563 = vmatprep.subr.mxu0 %v791_v0  ;;  %574 = vmatprep.subr.mxu1 %v791_v0  ;;  %v194_v12 = vld [vmem:[#allocation7 + $0x48] sm:$0xff]  ;;  %v193_v13 = vld [vmem:[#allocation7 + $0x40] sm:$0xff]  ;;  %v192_v14 = vld [vmem:[#allocation7 + $0x38] sm:$0xff] }
  0x42   :  { %564 = vmatpush3.msra.mxu0 %v102_v2  ;;  %575 = vmatpush3.msra.mxu1 %v199_v5  ;;  %v191_v15 = vld [vmem:[#allocation7 + $0x30] sm:$0xff]  ;;  %v190_v16 = vld [vmem:[#allocation7 + $0x28] sm:$0xff]  ;;  %v189_v17 = vld [vmem:[#allocation7 + $0x20] sm:$0xff] }
  0x43   :  { %565 = vmatprep.subr.mxu0 %v791_v0  ;;  %576 = vmatprep.subr.mxu1 %v791_v0  ;;  %v188_v18 = vld [vmem:[#allocation7 + $0x18] sm:$0xff]  ;;  %v187_v19 = vld [vmem:[#allocation7 + $0x10] sm:$0xff]  ;;  %v186_v20 = vld [vmem:[#allocation7 + $0x8] sm:$0xff] }
  0x44   :  { %566 = vmatpush3.msra.mxu0 %v101_v4  ;;  %577 = vmatpush3.msra.mxu1 %v198_v6  ;;  %v185_v21 = vld [vmem:[#allocation7] sm:$0xff]  ;;  %v294_v22 = vld [vmem:[#allocation8 + $0x78] sm:$0xff]  ;;  %v293_v23 = vld [vmem:[#allocation8 + $0x70] sm:$0xff] }
  0x45   :  { %567 = vmatprep.subr.mxu0 %v791_v0  ;;  %578 = vmatprep.subr.mxu1 %v791_v0  ;;  %v292_v24 = vld [vmem:[#allocation8 + $0x68] sm:$0xff]  ;;  %v291_v25 = vld [vmem:[#allocation8 + $0x60] sm:$0xff]  ;;  %v290_v26 = vld [vmem:[#allocation8 + $0x58] sm:$0xff] }
  0x46   :  { %568 = vmatpush3.msra.mxu0 %v100_v7  ;;  %579 = vmatpush3.msra.mxu1 %v197_v9  ;;  %v289_v27 = vld [vmem:[#allocation8 + $0x50] sm:$0xff]  ;;  %v288_v28 = vld [vmem:[#allocation8 + $0x48] sm:$0xff]  ;;  %v287_v29 = vld [vmem:[#allocation8 + $0x40] sm:$0xff] }
  0x47   :  { %570 = vmatmul.mubr.msk.f32.vlgmr.msra.gmra.mxu0 %vm111_vm1, %v99_v8  ;;  %580 = vmatprep.subr.mxu1 %v791_v0  ;;  %v286_v30 = vld [vmem:[#allocation8 + $0x38] sm:$0xff]  ;;  %v285_v31 = vld [vmem:[#allocation8 + $0x30] sm:$0xff]  ;;  %v284_v32 = vld [vmem:[#allocation8 + $0x28] sm:$0xff] }
  0x48   :  { %607 = vmatprep.subr.mxu0 %v791_v0  ;;  %581 = vmatpush3.msra.mxu1 %v196_v10  ;;  %v283_v33 = vld [vmem:[#allocation8 + $0x20] sm:$0xff]  ;;  %v282_v34 = vld [vmem:[#allocation8 + $0x18] sm:$0xff]  ;;  %v281_v39 = vld [vmem:[#allocation8 + $0x10] sm:$0xff] }
  0x49   :  { %639 = vmatprep.mubr.msk.f32.mxu0 %vm792_vm0, %v791_v0  ;;  %582 = vmatprep.subr.mxu1 %v791_v0  ;;  %v517_v35 = vld [vmem:[%s928_s2] ss:$0 sm:$0xff]  ;;  %v280_v40 = vld [vmem:[#allocation8 + $0x8] sm:$0xff]  ;;  %v279_v41 = vld [vmem:[#allocation8] sm:$0xff] }
  0x4a   :  { %583 = vmatpush3.msra.mxu1 %v195_v11  ;;  %608 = vmatpush3.msra.mxu0 %v294_v22  ;;  %v404_v42 = vld [vmem:[#allocation10 + $0xf8] sm:$0xff]  ;;  %v403_v43 = vld [vmem:[#allocation10 + $0xf0] sm:$0xff]  ;;  %v402_v44 = vld [vmem:[#allocation10 + $0xe8] sm:$0xff] }
  0x4b   :  { %584 = vmatprep.subr.mxu1 %v791_v0  ;;  %609 = vmatprep.subr.mxu0 %v791_v0  ;;  %v401_v45 = vld [vmem:[#allocation10 + $0xe0] sm:$0xff]  ;;  %v400_v46 = vld [vmem:[#allocation10 + $0xd8] sm:$0xff]  ;;  %v399_v47 = vld [vmem:[#allocation10 + $0xd0] sm:$0xff] }
  0x4c   :  { %585 = vmatpush3.msra.mxu1 %v194_v12  ;;  %610 = vmatpush3.msra.mxu0 %v293_v23  ;;  %v398_v48 = vld [vmem:[#allocation10 + $0xc8] sm:$0xff]  ;;  %v397_v49 = vld [vmem:[#allocation10 + $0xc0] sm:$0xff]  ;;  %v396_v50 = vld [vmem:[#allocation10 + $0xb8] sm:$0xff] }
  0x4d   :  { %586 = vmatprep.subr.mxu1 %v791_v0  ;;  %611 = vmatprep.subr.mxu0 %v791_v0  ;;  %v395_v51 = vld [vmem:[#allocation10 + $0xb0] sm:$0xff]  ;;  %v394_v52 = vld [vmem:[#allocation10 + $0xa8] sm:$0xff]  ;;  %v393_v53 = vld [vmem:[#allocation10 + $0xa0] sm:$0xff] }
  0x4e   :  { %587 = vmatpush3.msra.mxu1 %v193_v13  ;;  %612 = vmatpush3.msra.mxu0 %v292_v24  ;;  %v392_v54 = vld [vmem:[#allocation10 + $0x98] sm:$0xff]  ;;  %v391_v55 = vld [vmem:[#allocation10 + $0x90] sm:$0xff]  ;;  %v390_v56 = vld [vmem:[#allocation10 + $0x88] sm:$0xff] }
  0x4f   :  { %588 = vmatprep.subr.mxu1 %v791_v0  ;;  %613 = vmatprep.subr.mxu0 %v791_v0  ;;  %v389_v57 = vld [vmem:[#allocation10 + $0x80] sm:$0xff]  ;;  %v388_v58 = vld [vmem:[#allocation10 + $0x78] sm:$0xff]  ;;  %v387_v59 = vld [vmem:[#allocation10 + $0x70] sm:$0xff] }
  0x50   :  { %589 = vmatpush3.msra.mxu1 %v192_v14  ;;  %614 = vmatpush3.msra.mxu0 %v291_v25  ;;  %v386_v60 = vld [vmem:[#allocation10 + $0x68] sm:$0xff]  ;;  %v385_v61 = vld [vmem:[#allocation10 + $0x60] sm:$0xff]  ;;  %v384_v62 = vld [vmem:[#allocation10 + $0x58] sm:$0xff] }
  0x51   :  { %590 = vmatprep.subr.mxu1 %v791_v0  ;;  %615 = vmatprep.subr.mxu0 %v791_v0  ;;  %v383_v63 = vld [vmem:[#allocation10 + $0x50] sm:$0xff]  ;;  %v381_v1 = vld [vmem:[#allocation10 + $0x40] sm:$0xff]  ;;  %v380_v2 = vld [vmem:[#allocation10 + $0x38] sm:$0xff] }
  0x52   :  { %591 = vmatpush3.msra.mxu1 %v191_v15  ;;  %616 = vmatpush3.msra.mxu0 %v290_v26  ;;  %v379_v3 = vld [vmem:[#allocation10 + $0x30] sm:$0xff]  ;;  %v378_v4 = vld [vmem:[#allocation10 + $0x28] sm:$0xff]  ;;  %v519_v5 = vld [vmem:[%s930_s4] ss:$0 sm:$0xff] }
  0x53   :  { %592 = vmatprep.subr.mxu1 %v791_v0  ;;  %617 = vmatprep.subr.mxu0 %v791_v0  ;;  %v377_v10 = vld [vmem:[#allocation10 + $0x20] sm:$0xff]  ;;  %v376_v11 = vld [vmem:[#allocation10 + $0x18] sm:$0xff]  ;;  %v375_v12 = vld [vmem:[#allocation10 + $0x10] sm:$0xff] }
  0x54   :  { %593 = vmatpush3.msra.mxu1 %v190_v16  ;;  %618 = vmatpush3.msra.mxu0 %v289_v27  ;;  %v374_v13 = vld [vmem:[#allocation10 + $0x8] sm:$0xff]  ;;  %v373_v14 = vld [vmem:[#allocation10] sm:$0xff]  ;;  %v520_v15 = vld [vmem:[%s932_s6] ss:$0 sm:$0xff]  ;;  %s754_s6 = scalar_lea.vmem %s507_s19, 64 }
  0x55   :  { %594 = vmatprep.subr.mxu1 %v791_v0  ;;  %619 = vmatprep.subr.mxu0 %v791_v0  ;;  %v405_v24 = vld [vmem:[%s934_s8] sm:$0x3]  ;;  %p755_p11 = scmp.ne.s32.totalorder %s507_s19, %s754_s6  ;;  %p760_p13 = scmp.lt.s32.totalorder %s754_s6, %s754_s6 }
  0x56   :  { %595 = vmatpush3.msra.mxu1 %v189_v17  ;;  %620 = vmatpush3.msra.mxu0 %v288_v28 }
  0x57   :  { %596 = vmatprep.subr.mxu1 %v791_v0  ;;  %621 = vmatprep.subr.mxu0 %v791_v0  ;;  %p761_p0 = por %p760_p13, %p759_p12 }
  0x58   :  { %597 = vmatpush3.msra.mxu1 %v188_v18  ;;  %622 = vmatpush3.msra.mxu0 %v287_v29 }
  0x59   :  { %598 = vmatprep.subr.mxu1 %v791_v0  ;;  %623 = vmatprep.subr.mxu0 %v791_v0  ;;  %p762_p1 = pnand %p761_p0, %p755_p11 }
  0x5a   :  { %599 = vmatpush3.msra.mxu1 %v187_v19  ;;  %624 = vmatpush3.msra.mxu0 %v286_v30 }
  0x5b   :  { %600 = vmatprep.subr.mxu1 %v791_v0  ;;  %625 = vmatprep.subr.mxu0 %v791_v0 }
  0x5c   :  { %601 = vmatpush3.msra.mxu1 %v186_v20  ;;  %626 = vmatpush3.msra.mxu0 %v285_v31  ;;  %v407_v20 = vlaneseq }
  0x5d   :  { %602 = vmatprep.subr.mxu1 %v791_v0  ;;  %627 = vmatprep.subr.mxu0 %v791_v0 }
  0x5e   :  { %603 = vmatpush3.msra.mxu1 %v185_v21  ;;  %628 = vmatpush3.msra.mxu0 %v284_v32  ;;  %v408_v21 = vshrl.u32 %v407_v20, 7 }
  0x5f   :  { %629 = vmatprep.subr.mxu0 %v791_v0  ;;  %417 = vmatprep.subr.mxu1 %v404_v42 }
  0x60   :  { %630 = vmatpush3.msra.mxu0 %v283_v33  ;;  %v409_v22 = vsub.s32 0, %v408_v21  ;;  %v413_v23 = vsub.s32 1, %v408_v21 }
  0x61   :  { %631 = vmatprep.subr.mxu0 %v791_v0 }
  0x62   :  { %632 = vmatpush3.msra.mxu0 %v282_v34  ;;  %v410_v25 = vrot.slane %v405_v24, %v409_v22  ;;  %v414_v26 = vrot.slane %v405_v24, %v413_v23 }
  0x63   :  { %633 = vmatprep.subr.mxu0 %v791_v0 }
  0x64   :  { %634 = vmatpush3.msra.mxu0 %v281_v39 }
  0x65   :  { %635 = vmatprep.subr.mxu0 %v791_v0 }
  0x66   :  { %636 = vmatpush3.msra.mxu0 %v280_v40 }
  0x67   :  { %637 = vmatprep.subr.mxu0 %v791_v0 }
  0x68   :  { %638 = vmatpush3.msra.mxu0 %v279_v41 }
 0x107   :  { %v181_v36 = vpop.f32.mrf.mxu0 }
 0x108   :  { %v182_v37 = vadd.f32 %v517_v35, %v181_v36 }
 0x109   :  { %v571_v38 = vpop.f32.mrf.mxu0 }
 0x10a   :  { %605 = vmatmul.mubr.f32.vlgmr.msra.gmra.mxu1 %v182_v37 }
 0x10b   :  { %481 = vmatprep.mubr.f32.mxu1 %v791_v0  ;;  %418 = vmatpush1.msra.mxu1 %v403_v43  ;;  %v382_v0 = vld [vmem:[#allocation10 + $0x48] sm:$0xff] }
 0x10c   :  { %419 = vmatprep.subr.mxu1 %v402_v44 }
 0x10d   :  { %420 = vmatpush1.msra.mxu1 %v401_v45 }
 0x10e   :  { %421 = vmatprep.subr.mxu1 %v400_v46 }
 0x10f   :  { %422 = vmatpush1.msra.mxu1 %v399_v47 }
 0x110   :  { %423 = vmatprep.subr.mxu1 %v398_v48 }
 0x111   :  { %424 = vmatpush1.msra.mxu1 %v397_v49 }
 0x112   :  { %425 = vmatprep.subr.mxu1 %v396_v50 }
 0x113   :  { %426 = vmatpush1.msra.mxu1 %v395_v51 }
 0x114   :  { %427 = vmatprep.subr.mxu1 %v394_v52 }
 0x115   :  { %428 = vmatpush1.msra.mxu1 %v393_v53 }
 0x116   :  { %429 = vmatprep.subr.mxu1 %v392_v54 }
 0x117   :  { %430 = vmatpush1.msra.mxu1 %v391_v55 }
 0x118   :  { %431 = vmatprep.subr.mxu1 %v390_v56 }
 0x119   :  { %432 = vmatpush1.msra.mxu1 %v389_v57 }
 0x11a   :  { %433 = vmatprep.subr.mxu1 %v388_v58 }
 0x11b   :  { %434 = vmatpush1.msra.mxu1 %v387_v59 }
 0x11c   :  { %435 = vmatprep.subr.mxu1 %v386_v60 }
 0x11d   :  { %436 = vmatpush1.msra.mxu1 %v385_v61 }
 0x11e   :  { %437 = vmatprep.subr.mxu1 %v384_v62 }
 0x11f   :  { %438 = vmatpush1.msra.mxu1 %v383_v63 }
 0x120   :  { %439 = vmatprep.subr.mxu1 %v382_v0 }
 0x121   :  { %440 = vmatpush1.msra.mxu1 %v381_v1 }
 0x122   :  { %441 = vmatprep.subr.mxu1 %v380_v2 }
 0x123   :  { %442 = vmatpush1.msra.mxu1 %v379_v3 }
 0x124   :  { %443 = vmatprep.subr.mxu1 %v378_v4 }
 0x125   :  { %444 = vmatpush1.msra.mxu1 %v377_v10 }
 0x126   :  { %445 = vmatprep.subr.mxu1 %v376_v11 }
 0x127   :  { %446 = vmatpush1.msra.mxu1 %v375_v12 }
 0x128   :  { %447 = vmatprep.subr.mxu1 %v374_v13 }
 0x129   :  { %448 = vmatpush1.msra.mxu1 %v373_v14 }
 0x1ca   :  { %v274_v6 = vpop.f32.mrf.mxu1 }
 0x1cb   :  { %v275_v7 = vadd.f32 %v519_v5, %v274_v6 }
 0x1cc   :  { %v606_v8 = vpop.f32.mrf.mxu1 }
 0x1cd   :  { %v278_v9 = vmax.f32 %v275_v7, 0.0 }
 0x1cf   :  { %640 = vmatmul.mubr.f32.vlgmr.msra.gmra.mxu0 %v278_v9 }
 0x28f   :  { %v368_v16 = vpop.f32.mrf.mxu0 }
 0x290   :  { %v369_v17 = vadd.f32 %v520_v15, %v368_v16 }
 0x291   :  { %v641_v18 = vpop.f32.mrf.mxu0 }
 0x292   :  { %v372_v19 = vmax.f32 %v369_v17, 0.0 }
 0x294   :  { %482 = vmatmul.mubr.f32.vlgmr.msra.gmra.mxu1 %v372_v19 }
 0x354   :  { %v483_v27 = vpop.f32.mrf.mxu1 }
 0x355   :  { %v484_v29 = vadd.f32 %v483_v27, %v410_v25 }
 0x356   :  { %v485_v28 = vpop.f32.mrf.mxu1 }
 0x357   :  { %v486_v30 = vadd.f32 %v485_v28, %v414_v26 }
 0x359   :  { %v490_v31 = vcombine.low %v484_v29, %v486_v30 }
 0x35b   :  { %521 = vst.sshfl [vmem:[#allocation11] sm:$0x33 pattern:$0x76325410] %v490_v31 }
 0x35c   :  { %765 = shalt.err (!%p762_p1)
}
 0x35d   :  { %509 = dma.vmem_to_hbm [thread:$0]  %s507_s19, 64, %s935_s9, [#allocation4]  }
 0x35e   :  { %780 = dma.done.wait [#allocation4], 64  }
 0x35f   :  { %781 = vsyncadd [#allocation4], 4294967232 }
 0x360   :  { %513 = vsyncpa [#allocation3], 1 }
 0x361   :  { %514 = vsyncpa [#allocation6], 1 }
 0x362   :  { %515 = vsyncpa [#allocation9], 1 }
 0x363   :  { %516 = vsyncpa [#allocation4], 1 }

</bundles_post_ra>
